<compile_context>
chip_gen: v5e
topology: v5e:2x2
jax: 0.10.0
libtpu: 0.0.40
codegen_flags: <defaults>
</compile_context>

<pallas_src>
import jax
import jax.numpy as jnp
from jax.experimental import pallas as pl
from jax.experimental.pallas import tpu as pltpu

_VMEM_LIMIT_BYTES = 64 * 1024 * 1024  # safe on all gens (v7x physical VMEM = 64 MiB/TC)


# --------------------------------------------------------------------------- #
# Kernels
# --------------------------------------------------------------------------- #
def _hidden_kernel(e_ref, w1_ref, b1_ref, h_ref):
    # hidden = tanh(E @ W1 + b1); f32 accumulation on the MXU, stored in the
    # compute dtype (bf16) so the second kernel needs no per-step cast.
    h_ref[...] = jnp.tanh(
        jnp.dot(e_ref[...], w1_ref[...], preferred_element_type=jnp.float32)
        + b1_ref[...].astype(jnp.float32)
    ).astype(h_ref.dtype)


def _proj_kernel(h_ref, w2_ref, b2_ref, o_ref):
    # out tile = hidden @ W2[:, j-tile] + b2[j-tile]; f32 accumulation.
    o_ref[...] = (
        jnp.dot(h_ref[...], w2_ref[...], preferred_element_type=jnp.float32)
        + b2_ref[...].astype(jnp.float32)
    ).astype(o_ref.dtype)


# --------------------------------------------------------------------------- #
# Tile selection (VMEM-budget driven)
# --------------------------------------------------------------------------- #
def _row_tile(n, reduce_dim, bytes_per_el, budget_bytes=16 << 20, cap=1024):
    """Row tile: full N when it fits; otherwise a multiple-of-8 tile whose
    double-buffered (tm, reduce_dim) activation slab stays under budget."""
    by_budget = max(8, budget_bytes // (2 * reduce_dim * bytes_per_el))
    t = min(cap, by_budget)
    if n <= t:
        return n                       # block dim == full array dim is always legal
    return max(8, (t // 8) * 8)


def _col_tile(total, reduce_dim, bytes_per_el, budget_bytes=24 << 20, cap=1024):
    """Lane-dense column tile whose double-buffered (reduce_dim, tile) weight
    slab stays under budget; multiple of 128 when it is a partial tile."""
    by_budget = max(1, budget_bytes // (2 * reduce_dim * bytes_per_el))
    t = min(cap, by_budget)
    if total <= t:
        return total                   # full dim: no 128-divisibility needed
    return max(128, (t // 128) * 128)


# --------------------------------------------------------------------------- #
# Wrappers
# --------------------------------------------------------------------------- #
def _projected_embeds(embeds, w1, b1, w2, b2, *, compute_dtype=jnp.bfloat16,
                      out_dtype=jnp.float32):
    """Returns tanh(embeds @ w1 + b1) @ w2 + b2 as an [N, out_dim] array."""
    n, d = embeds.shape
    mid = w1.shape[1]
    out_dim = w2.shape[1]
    bpe = jnp.dtype(compute_dtype).itemsize

    # Matmul operands in the MXU-native dtype; biases stay f32.
    e_c = embeds.astype(compute_dtype)
    w1_c = w1.astype(compute_dtype)
    w2_c = w2.astype(compute_dtype)
    b1_c = b1.astype(jnp.float32)
    b2_c = b2.astype(jnp.float32)

    # ---- layer 1: hidden = tanh(E @ W1 + b1). Tiny next to the W2 stream;
    # W1 is tiled along mid so it is never held resident as one giant block.
    tm1 = _row_tile(n, d, bpe)
    tc = _col_tile(mid, d, bpe, budget_bytes=16 << 20)
    hidden = pl.pallas_call(
        _hidden_kernel,
        out_shape=jax.ShapeDtypeStruct((n, mid), compute_dtype),
        grid=(pl.cdiv(n, tm1), pl.cdiv(mid, tc)),
        in_specs=[
            pl.BlockSpec((tm1, d), lambda i, j: (i, 0)),   # E row tile
            pl.BlockSpec((d, tc), lambda i, j: (0, j)),    # W1 column slab
            pl.BlockSpec((1, tc), lambda i, j: (0, j)),    # b1 column slab
        ],
        out_specs=pl.BlockSpec((tm1, tc), lambda i, j: (i, j)),
        compiler_params=pltpu.CompilerParams(
            dimension_semantics=("parallel", "parallel"),
            vmem_limit_bytes=_VMEM_LIMIT_BYTES,
        ),
    )(e_c, w1_c, b1_c)

    # ---- layer 2: out = hidden @ W2 + b2. Dominated by the W2 HBM stream:
    # W2 is streamed in lane-dense (mid, tn) slabs; one row tile covers all of
    # N whenever it fits so W2 is read from HBM exactly once. No scratch carry
    # -> both grid axes are independent and "parallel" (v7x megacore).
    tm = _row_tile(n, mid, bpe)
    tn = _col_tile(out_dim, mid, bpe, budget_bytes=24 << 20)
    out = pl.pallas_call(
        _proj_kernel,
        out_shape=jax.ShapeDtypeStruct((n, out_dim), out_dtype),
        grid=(pl.cdiv(n, tm), pl.cdiv(out_dim, tn)),
        in_specs=[
            pl.BlockSpec((tm, mid), lambda i, j: (i, 0)),  # hidden row tile (bf16)
            pl.BlockSpec((mid, tn), lambda i, j: (0, j)),  # W2: stream over j
            pl.BlockSpec((1, tn), lambda i, j: (0, j)),    # b2: stream over j
        ],
        out_specs=pl.BlockSpec((tm, tn), lambda i, j: (i, j)),
        compiler_params=pltpu.CompilerParams(
            dimension_semantics=("parallel", "parallel"),
            vmem_limit_bytes=_VMEM_LIMIT_BYTES,
        ),
    )(hidden, w2_c, b2_c)
    return out


def prompt_embedding_forward(embeds, w1, b1, w2, b2, batch_size=1,
                             compute_dtype=jnp.bfloat16, out_dtype=jnp.float32):
    """embeds: [N, D]; w1: [D, mid]; b1: [1, mid]; w2: [mid, out]; b2: [1, out].

    Returns [batch_size, N, out]. The batch axis is a lazy broadcast (matching
    torch's .expand view), never B materialized HBM copies from the kernel.
    """
    n, _ = embeds.shape
    out_dim = w2.shape[1]
    projected = _projected_embeds(embeds, w1, b1, w2, b2,
                                  compute_dtype=compute_dtype,
                                  out_dtype=out_dtype)
    out = projected[None, :, :]                    # unsqueeze(0)
    if batch_size != 1:
        # expand(B, -1, -1): under jit XLA fuses this broadcast into consumers.
        out = jnp.broadcast_to(out, (batch_size, n, out_dim))
    return out


# --------------------------------------------------------------------------- #
# Self-test
# --------------------------------------------------------------------------- #
if __name__ == "__main__":
    # Small shapes consistent with the module's constructor.
    num_embeddings = 8
    embedding_dim = 32
    mid_dim = 128
    num_layers = 2
    out_dim = num_layers * 2 * embedding_dim  # 128
    batch_size = 2

    key = jax.random.PRNGKey(0)
    k_e, k_w1, k_b1, k_w2, k_b2 = jax.random.split(key, 5)

    # embeds ~ U(-0.5, 0.5); Linear params ~ U(-1/sqrt(fan_in), 1/sqrt(fan_in)).
    embeds = jax.random.uniform(
        k_e, (num_embeddings, embedding_dim), jnp.float32, -0.5, 0.5
    )
    bound1 = 1.0 / jnp.sqrt(embedding_dim)
    w1 = jax.random.uniform(k_w1, (embedding_dim, mid_dim), jnp.float32, -bound1, bound1)
    b1 = jax.random.uniform(k_b1, (1, mid_dim), jnp.float32, -bound1, bound1)
    bound2 = 1.0 / jnp.sqrt(mid_dim)
    w2 = jax.random.uniform(k_w2, (mid_dim, out_dim), jnp.float32, -bound2, bound2)
    b2 = jax.random.uniform(k_b2, (1, out_dim), jnp.float32, -bound2, bound2)

    out = prompt_embedding_forward(embeds, w1, b1, w2, b2, batch_size=batch_size)
    out = jax.block_until_ready(out)
    assert out.shape == (batch_size, num_embeddings, out_dim)

    # Reference with the same bf16 matmul operands / f32 accumulation as the kernels.
    e_c = embeds.astype(jnp.bfloat16)
    h_ref = jnp.tanh(
        jnp.dot(e_c, w1.astype(jnp.bfloat16), preferred_element_type=jnp.float32) + b1
    ).astype(jnp.bfloat16)
    ref2d = (
        jnp.dot(h_ref, w2.astype(jnp.bfloat16), preferred_element_type=jnp.float32)
        + b2
    )
    ref = jnp.broadcast_to(ref2d[None], (batch_size, num_embeddings, out_dim))
    assert jnp.allclose(out, ref, atol=1e-3, rtol=1e-3)

    # Loose sanity check against the pure-f32 math too (bf16 precision tradeoff
    # is intentional and covered by the tolerance).
    ref_f32 = jnp.tanh(embeds @ w1 + b1) @ w2 + b2
    assert jnp.allclose(out[0], ref_f32, atol=3e-2, rtol=3e-2)

    print("KERNEL_OK")
</pallas_src>

<mosaic_0001>
module attributes {stable_mosaic.version = 11 : i64} {
  func.func @_hidden_kernel(%arg0: i32, %arg1: i32, %arg2: memref<8x32xbf16, #tpu.memory_space<vmem>>, %arg3: memref<32x128xbf16, #tpu.memory_space<vmem>>, %arg4: memref<1x128xf32, #tpu.memory_space<vmem>>, %arg5: memref<8x128xbf16, #tpu.memory_space<vmem>>) attributes {dimension_semantics = [#tpu.dimension_semantics<parallel>, #tpu.dimension_semantics<parallel>], iteration_bounds = array<i64: 1, 1>, scalar_prefetch = 0 : i64, scratch_operands = 0 : i64, tpu.core_type = #tpu.core_type<tc>, window_params = [{transform_indices = @transform_0, window_bounds = array<i64: 8, 32>}, {transform_indices = @transform_1, window_bounds = array<i64: 32, 128>}, {transform_indices = @transform_2, window_bounds = array<i64: 1, 128>}, {transform_indices = @transform_3, window_bounds = array<i64: 8, 128>}]} {
    %c0 = arith.constant 0 : index
    %c0_0 = arith.constant 0 : index
    %0 = vector.load %arg2[%c0, %c0_0] : memref<8x32xbf16, #tpu.memory_space<vmem>>, vector<8x32xbf16>
    %c0_1 = arith.constant 0 : index
    %c0_2 = arith.constant 0 : index
    %1 = vector.load %arg3[%c0_1, %c0_2] : memref<32x128xbf16, #tpu.memory_space<vmem>>, vector<32x128xbf16>
    %cst = arith.constant dense<0.000000e+00> : vector<8x128xf32>
    %2 = tpu.matmul %0, %1, %cst {dimension_numbers = #tpu.dot_dimension_numbers<[1], [0], [0], [1], [0, 0, 1, 1], [], []>} : vector<8x32xbf16>, vector<32x128xbf16>, vector<8x128xf32> -> vector<8x128xf32>
    %c0_3 = arith.constant 0 : index
    %c0_4 = arith.constant 0 : index
    %3 = vector.load %arg4[%c0_3, %c0_4] : memref<1x128xf32, #tpu.memory_space<vmem>>, vector<1x128xf32>
    %4 = vector.broadcast %3 : vector<1x128xf32> to vector<8x128xf32>
    %5 = arith.addf %2, %4 : vector<8x128xf32>
    %6 = math.tanh %5 : vector<8x128xf32>
    %7 = arith.truncf %6 : vector<8x128xf32> to vector<8x128xbf16>
    %c0_5 = arith.constant 0 : index
    %c0_6 = arith.constant 0 : index
    %8 = vector.load %arg5[%c0_5, %c0_6] : memref<8x128xbf16, #tpu.memory_space<vmem>>, vector<8x128xbf16>
    tpu.vector_store %arg5[%c0_5, %c0_6], %7 {strides = array<i32>} : memref<8x128xbf16, #tpu.memory_space<vmem>>, vector<8x128xbf16>,
    return
  }
  func.func @transform_0(%arg0: i32, %arg1: i32) -> (i32, i32) {
    %c0_i32 = arith.constant 0 : i32
    %c0_i32_0 = arith.constant 0 : i32
    return %arg0, %c0_i32 : i32, i32
  }
  func.func @transform_1(%arg0: i32, %arg1: i32) -> (i32, i32) {
    %c0_i32 = arith.constant 0 : i32
    %c0_i32_0 = arith.constant 0 : i32
    return %c0_i32, %arg1 : i32, i32
  }
  func.func @transform_2(%arg0: i32, %arg1: i32) -> (i32, i32) {
    %c0_i32 = arith.constant 0 : i32
    %c0_i32_0 = arith.constant 0 : i32
    return %c0_i32, %arg1 : i32, i32
  }
  func.func @transform_3(%arg0: i32, %arg1: i32) -> (i32, i32) {
    %c0_i32 = arith.constant 0 : i32
    return %arg0, %arg1 : i32, i32
  }
}

</mosaic_0001>

<bundles_post_ra>
// kernel: tpu_custom_call.1
= control target key start
LH: loop header
LB: loop body
LE: loop exit
PB: predicated region body
PF: predicated region fallthrough
CT: control target
= control target key end

     0   :  { %8 = vsyncpa [#allocation3], 0  ;;  %s239_s0 = inlined_call_operand.hbm [shape: bf16[8,32], index: 0, kind: input, shape index: {}]   ;;  %s240_s1 = inlined_call_operand.hbm [shape: bf16[32,128], index: 1, kind: input, shape index: {}]   ;;  %s241_s2 = inlined_call_operand.vmem [shape: f32[1,128], index: 2, kind: input, shape index: {}]   ;;  %s242_s3 = inlined_call_operand.hbm [shape: bf16[8,128], index: 3, kind: output, shape index: {}]  }
   0x1   :  { %9 = vsyncpa [#allocation6], 0 }
   0x2   :  { %10 = vsyncpa [#allocation4], 0  ;;  %s16_s14 = sshll.u32 %s239_s0, 4  ;;  %s202_s15 = smov [#allocation2]   ;;  %s17_s14 = int_to_ptr.hbm [resolvable:$true] %s16_s14 }
   0x3   :  { %s18_s16 = sshll.u32 %s202_s15, 4  ;;  %s26_s19 = sshll.u32 %s240_s1, 4  ;;  %s19_s16 = int_to_ptr.vmem [resolvable:$true] %s18_s16  ;;  %s27_s19 = int_to_ptr.hbm [resolvable:$true] %s26_s19 }
   0x4   :  { %21 = dma.hbm_to_vmem [thread:$0]  %s17_s14, 64, %s19_s16, [#allocation3]  }
   0x5   :  { %s203_s20 = smov [#allocation5]   ;;  %s204_s22 = smov 64  }
   0x6   :  { %s28_s21 = sshll.u32 %s203_s20, 4  ;;  %s205_s23 = smov 4   ;;  %s29_s21 = int_to_ptr.vmem [resolvable:$true] %s28_s21 }
   0x7   :  { %34 = dma.hbm_to_vmem [thread:$0]  %s27_s19, 256, %s29_s21, [#allocation6], %s204_s22, %s204_s22, %s205_s23  }
   0x8   :  { %196 = dma.done.wait [#allocation3], 64  }
   0x9   :  { %197 = vsyncadd [#allocation3], 4294967232 }
   0xa   :  { %198 = dma.done.wait [#allocation6], 256  }
   0xb   :  { %199 = vsyncadd [#allocation6], 4294967040  ;;  %v115_v0 = vld [vmem:[#allocation5 + $0x8] sm:$0xff]  ;;  %v114_v1 = vld [vmem:[#allocation5] sm:$0xff]  ;;  %vm67_vm0 = vcmask 261120   ;;  %s206_s24 = smov [#allocation7]  }
   0xc   :  { %77 = vmatpush.bf16.msra.mxu0 %v115_v0  ;;  %v46_v2 = vld [vmem:[#allocation2] sm:$0xf]  ;;  %s92_s25 = sshll.u32 %s206_s24, 4  ;;  %s94_s28 = sshll.u32 %s242_s3, 4  ;;  %s93_s25 = int_to_ptr.vmem [resolvable:$true] %s92_s25  ;;  %s95_s28 = int_to_ptr.hbm [resolvable:$true] %s94_s28 }
   0xd   :  { %v121_v3 = vld [vmem:[%s241_s2] ss:$0 sm:$0xff] }
  0x10   :  { %78 = vmatpush.bf16.msra.mxu0 %v114_v1 }
  0x13   :  { %113 = vmatmul.msk.bf16.vlgmr.msra.gmra.mxu0 %vm67_vm0, %v46_v2 }
  0x90   :  { %v80_v4 = vpop.f32.mrf.mxu0 }
  0x91   :  { %v81_v5 = vadd.f32 %v121_v3, %v80_v4 }
  0x93   :  { %122 = vtanh.f32 %v81_v5 }
  0x98   :  { %v82_v6 = vpop.f32.mrf.mxu0 }
  0x99   :  { %v123_v7 = vpop.eup %122 }
  0x9a   :  { %v85_v8 = vpack.c.bf16 %v123_v7, %v123_v7 }
  0x9c   :  { %86 = vst [vmem:[#allocation7] sm:$0xf] %v85_v8 }
  0x9d   :  { %97 = dma.vmem_to_hbm [thread:$0]  %s93_s25, 64, %s95_s28, [#allocation4]  }
  0x9e   :  { %200 = dma.done.wait [#allocation4], 64  }
  0x9f   :  { %201 = vsyncadd [#allocation4], 4294967232 }
  0xa0   :  { %102 = vsyncpa [#allocation3], 1 }
  0xa1   :  { %103 = vsyncpa [#allocation6], 1 }
  0xa2   :  { %104 = vsyncpa [#allocation4], 1 }

</bundles_post_ra>
